<compile_context>
chip_gen: v7x
topology: tpu7x:2x2x1
jax: 0.10.0
libtpu: 0.0.40
codegen_flags: <defaults>
</compile_context>

<pallas_src>
import math

import jax
import jax.numpy as jnp
from jax.experimental import pallas as pl
from jax.experimental.pallas import tpu as pltpu

# ----------------------------- model constants ------------------------------
D_MODEL = 64
NHEAD = 4
HEAD_DIM = D_MODEL // NHEAD
DFF = 256
PATCH = 4
LN_EPS = 1e-5
BN_EPS = 1e-5
LANE = 128
FC1_WEIGHT_QUANT = True      # int8 + per-column scale, dequantized on load
# TODO(synk): on v7x an fp8(e4m3) fc1 weight would use the native MXU fp8 path;
# the int8 dequant-on-load below is the portable variant.


def _round_up(n, m):
    return ((n + m - 1) // m) * m


# ----------------------------- in-kernel helpers ----------------------------
def _erf(x):
    # Abramowitz & Stegun 7.1.26 polynomial erf; divide replaced by an EUP
    # approx reciprocal (error << the bf16/approx-softmax noise already accepted).
    a1, a2, a3, a4, a5 = 0.254829592, -0.284496736, 1.421413741, -1.453152027, 1.061405429
    p = 0.3275911
    s = jnp.where(x >= 0.0, 1.0, -1.0)
    z = jnp.abs(x)
    t = pl.reciprocal(1.0 + p * z, approx=True)
    poly = ((((a5 * t + a4) * t + a3) * t + a2) * t + a1) * t
    return s * (1.0 - poly * jnp.exp(-z * z))


def _gelu(x):
    # erf-based gelu, matching PyTorch F.gelu default (up to approx reciprocal)
    return 0.5 * x * (1.0 + _erf(x * 0.7071067811865476))


def _layernorm(x, g, b):
    mu = jnp.mean(x, axis=-1, keepdims=True)
    xc = x - mu
    var = jnp.mean(xc * xc, axis=-1, keepdims=True)
    return xc * jax.lax.rsqrt(var + LN_EPS) * g + b


def _mm(a, b):
    return jnp.dot(a, b, preferred_element_type=jnp.float32)


def _mm_t(a, b):  # a @ b.T without materializing a transpose
    return jax.lax.dot_general(a, b, (((1,), (1,)), ((), ())),
                               preferred_element_type=jnp.float32)


def _bf16(x):
    return x.astype(jnp.bfloat16)


# ------------------------------ Pallas kernels -------------------------------
def _patch_embed_kernel(xp_ref, w_ref, b_ref, o_ref):
    # conv(stride=k) as matmul; eval-BatchNorm already folded into w/b; + ReLU
    y = _mm(xp_ref[...], w_ref[...]) + b_ref[...]
    o_ref[...] = jnp.maximum(y, 0.0).astype(o_ref.dtype)


def _encoder_kernel(xq_ref, xf_ref, wq_ref, bq_ref, wkv_ref, bkv_ref,
                    wo_ref, bo_ref, g1_ref, be1_ref, w1_ref, b1_ref,
                    w2_ref, b2_ref, g2_ref, be2_ref, o_ref, kbd_ref, vbd_ref):
    # One post-LN TransformerEncoderLayer for one (batch, query-tile) grid step.
    L = xf_ref.shape[1]
    Lp = kbd_ref.shape[0] // NHEAD        # per-head row stride, lane aligned

    # --- per-batch work: K/V projection + block-"diagonal" operand build -----
    @pl.when(pl.program_id(1) == 0)
    def _build_kv():
        kv = _mm(_bf16(xf_ref[0]), wkv_ref[...]) + bkv_ref[...]   # (L, 2D) f32
        if Lp > L:                                                 # pad to lane mult
            kv = jnp.concatenate(
                [kv, jnp.zeros((Lp - L, 2 * D_MODEL), jnp.float32)], axis=0)
        k = kv[:, :D_MODEL]
        v = kv[:, D_MODEL:]
        rows = NHEAD * Lp
        row_h = jax.lax.broadcasted_iota(jnp.int32, (rows, D_MODEL), 0) // Lp
        col_h = jax.lax.broadcasted_iota(jnp.int32, (rows, D_MODEL), 1) // HEAD_DIM
        blk = row_h == col_h
        kbd_ref[...] = jnp.where(
            blk, jnp.concatenate([k] * NHEAD, axis=0), 0.0).astype(jnp.bfloat16)
        vbd_ref[...] = jnp.where(
            blk, jnp.concatenate([v] * NHEAD, axis=0), 0.0).astype(jnp.bfloat16)

    # --- per-query-tile work --------------------------------------------------
    xq = xq_ref[0].astype(jnp.float32)                             # (TQ, D)
    q = _bf16(_mm(_bf16(xq), wq_ref[...]) + bq_ref[...])           # scale folded in

    # one full-width QK^T against the block-diagonal K operand
    s = _mm_t(q, kbd_ref[...])                                     # (TQ, NHEAD*Lp) f32

    ctx = jnp.zeros((xq.shape[0], D_MODEL), jnp.float32)
    for h in range(NHEAD):                                         # static unroll
        sh = s[:, h * Lp:h * Lp + L]                               # aligned start
        m = jnp.max(sh, axis=-1, keepdims=True)
        e = jnp.exp(sh - m)
        p = e * pl.reciprocal(jnp.sum(e, axis=-1, keepdims=True), approx=True)
        # full N=64 PV matmul; zero columns of vbd keep heads separated
        ctx = ctx + _mm(_bf16(p), vbd_ref[h * Lp:h * Lp + L, :])

    attn = _mm(_bf16(ctx), wo_ref[...]) + bo_ref[...]
    x1 = _layernorm(xq + attn, g1_ref[...], be1_ref[...])

    hdn = _gelu(_mm(_bf16(x1), w1_ref[...]) + b1_ref[...])         # (TQ, DFF)
    ffn = _mm(_bf16(hdn), w2_ref[...]) + b2_ref[...]               # (TQ, D)

    o_ref[0] = _layernorm(x1 + ffn, g2_ref[...], be2_ref[...]).astype(o_ref.dtype)


def _bottleneck_head_kernel(flat_ref, w1_ref, sc_ref, b1_ref, w2_ref, b2_ref,
                            wh_ref, bh_ref, o_ref, acc_ref):
    # K-tiled fc1 with f32 accumulator; int8 weight dequantized on load, the
    # per-column scale applied in the finalize epilogue; fc2 + head fused.
    k = pl.program_id(0)

    @pl.when(k == 0)
    def _init():
        acc_ref[...] = jnp.zeros_like(acc_ref)

    acc_ref[...] += _mm(flat_ref[...], w1_ref[...].astype(jnp.bfloat16))

    @pl.when(k == pl.num_programs(0) - 1)
    def _finalize():
        h1 = jnp.maximum(acc_ref[...] * sc_ref[...] + b1_ref[...], 0.0)   # fc1+ReLU
        h2 = jnp.maximum(_mm(h1, w2_ref[...]) + b2_ref[...], 0.0)         # fc2+ReLU
        o_ref[...] = _mm(h2, wh_ref[...]) + bh_ref[...]                   # head


# ------------------------------ tiling helpers --------------------------------
def _pick_tile(n, cands):
    for c in cands:
        if n % c == 0:
            return c
    return n


def _pick_ktile(k, cands=(14336, 28672, 8192, 4096, 2048, 1024, 512, 256, 128)):
    # Prefer 14336 so the real K=200704 splits into 14 steps (3.6 MB int8 block,
    # double-buffered well within every generation's scoped VMEM).
    for c in cands:
        if k % c == 0 and k // c >= 2:
            return c
    return k


# ------------------------------ pallas wrappers -------------------------------
def patch_embed_call(xp, w, b):
    M, K = xp.shape
    N = w.shape[1]
    tm = _pick_tile(M, (448, 512, 256, 128, 64, 32, 16))
    return pl.pallas_call(
        _patch_embed_kernel,
        out_shape=jax.ShapeDtypeStruct((M, N), jnp.bfloat16),
        grid=(M // tm,),
        in_specs=[pl.BlockSpec((tm, K), lambda i: (i, 0)),
                  pl.BlockSpec((K, N), lambda i: (0, 0)),
                  pl.BlockSpec((1, N), lambda i: (0, 0))],
        out_specs=pl.BlockSpec((tm, N), lambda i: (i, 0)),
        compiler_params=pltpu.CompilerParams(dimension_semantics=("parallel",)),
    )(xp, w, b.reshape(1, N))


def prepare_encoder_layer(lyr):
    # Host-side repack: PyTorch layout -> kernel layout, bf16 MXU weights,
    # softmax scale folded into wq/bq.
    D = D_MODEL
    ipw, ipb = lyr["in_proj_w"], lyr["in_proj_b"]        # (3D, D), (3D,)
    scale = 1.0 / math.sqrt(HEAD_DIM)
    return (
        (ipw[:D].T * scale).astype(jnp.bfloat16),        # wq  (D, D)
        (ipb[:D] * scale).reshape(1, D).astype(jnp.float32),
        ipw[D:].T.astype(jnp.bfloat16),                  # wkv (D, 2D)
        ipb[D:].reshape(1, 2 * D),
        lyr["out_proj_w"].T.astype(jnp.bfloat16),        # wo  (D, D)
        lyr["out_proj_b"].reshape(1, D),
        lyr["ln1_g"].reshape(1, D), lyr["ln1_b"].reshape(1, D),
        lyr["w1"].T.astype(jnp.bfloat16), lyr["b1"].reshape(1, DFF),
        lyr["w2"].T.astype(jnp.bfloat16), lyr["b2"].reshape(1, D),
        lyr["ln2_g"].reshape(1, D), lyr["ln2_b"].reshape(1, D),
    )


def encoder_layer_call(x, consts, tq):
    B, L, D = x.shape
    nq = L // tq
    lp = _round_up(L, LANE)                # lane-aligned per-head stride

    def cspec(a):
        return pl.BlockSpec(a.shape, lambda b, qi: (0, 0))

    return pl.pallas_call(
        _encoder_kernel,
        out_shape=jax.ShapeDtypeStruct((B, L, D), jnp.bfloat16),
        grid=(B, nq),
        in_specs=[pl.BlockSpec((1, tq, D), lambda b, qi: (b, qi, 0)),   # query tile
                  pl.BlockSpec((1, L, D), lambda b, qi: (b, 0, 0))]     # full seq
                 + [cspec(a) for a in consts],
        out_specs=pl.BlockSpec((1, tq, D), lambda b, qi: (b, qi, 0)),
        scratch_shapes=[pltpu.VMEM((NHEAD * lp, D), jnp.bfloat16),      # K block-diag
                        pltpu.VMEM((NHEAD * lp, D), jnp.bfloat16)],     # V block-diag
        compiler_params=pltpu.CompilerParams(
            # qi carries per-batch scratch -> must be "arbitrary"; batch axis
            # stays "parallel" for v7x megacore.
            dimension_semantics=("parallel", "arbitrary"),
            vmem_limit_bytes=48 * 1024 * 1024),
    )(x, x, *consts)


def bottleneck_head_call(flat, params):
    B, K = flat.shape
    NC = params["head_b"].shape[0]
    tk = _pick_ktile(K)
    w1f = params["fc1_w"].T                              # (K, DFF) f32
    if FC1_WEIGHT_QUANT:
        col_scale = jnp.maximum(jnp.max(jnp.abs(w1f), axis=0), 1e-12) / 127.0
        w1 = jnp.clip(jnp.round(w1f / col_scale[None, :]), -127, 127).astype(jnp.int8)
        sc = col_scale.reshape(1, DFF).astype(jnp.float32)
    else:
        w1 = w1f.astype(jnp.bfloat16)
        sc = jnp.ones((1, DFF), jnp.float32)
    b1 = params["fc1_b"].reshape(1, DFF)
    w2 = params["fc2_w"].T                               # (DFF, 128)
    b2 = params["fc2_b"].reshape(1, 128)
    wh = params["head_w"].T                              # (128, NC)
    bh = params["head_b"].reshape(1, NC)
    return pl.pallas_call(
        _bottleneck_head_kernel,
        out_shape=jax.ShapeDtypeStruct((B, NC), jnp.float32),
        grid=(K // tk,),
        in_specs=[pl.BlockSpec((B, tk), lambda k: (0, k)),
                  pl.BlockSpec((tk, DFF), lambda k: (k, 0)),
                  pl.BlockSpec((1, DFF), lambda k: (0, 0)),
                  pl.BlockSpec((1, DFF), lambda k: (0, 0)),
                  pl.BlockSpec((DFF, 128), lambda k: (0, 0)),
                  pl.BlockSpec((1, 128), lambda k: (0, 0)),
                  pl.BlockSpec((128, NC), lambda k: (0, 0)),
                  pl.BlockSpec((1, NC), lambda k: (0, 0))],
        out_specs=pl.BlockSpec((B, NC), lambda k: (0, 0)),
        scratch_shapes=[pltpu.VMEM((B, DFF), jnp.float32)],
        compiler_params=pltpu.CompilerParams(dimension_semantics=("arbitrary",)),
    )(flat, w1, sc, b1, w2, b2, wh, bh)


# ------------------------------- JAX glue ------------------------------------
def extract_patches(x, P):
    # x: [B, C, H, W] NCHW -> [B*L, C*P*P] with per-patch order (c, kh, kw)
    B, C, H, W = x.shape
    hp, wp = H // P, W // P
    x = x.reshape(B, C, hp, P, wp, P)
    x = x.transpose(0, 2, 4, 1, 3, 5)                # [B, hp, wp, C, P, P]
    return x.reshape(B * hp * wp, C * P * P)


def forward(x, params):
    B, C, H, W = x.shape
    hp, wp = H // PATCH, W // PATCH
    L = hp * wp

    # patch_embed: Conv2d(3,64,k=4,s=4) + BatchNorm2d(eval, folded) + ReLU
    xp = extract_patches(x, PATCH)                                 # [B*L, 48]
    s = params["bn_gamma"] * jax.lax.rsqrt(params["bn_var"] + BN_EPS)
    w_pe = (params["conv_w"].reshape(D_MODEL, C * PATCH * PATCH).T
            * s[None, :]).astype(jnp.bfloat16)
    b_pe = ((params["conv_b"] - params["bn_mean"]) * s
            + params["bn_beta"]).astype(jnp.float32)
    y = patch_embed_call(xp.astype(jnp.bfloat16), w_pe, b_pe)      # [B*L, 64] bf16

    # flatten(2).permute(2,0,1) -> tokens (kept batch-first; math identical)
    x_seq = y.reshape(B, L, D_MODEL)

    # 2 x TransformerEncoderLayer (post-LN, gelu, dropout=identity)
    tq = _pick_tile(L, (224, 112, 448, 256, 128, 64, 32, 16))
    for lyr in params["layers"]:
        x_seq = encoder_layer_call(x_seq, prepare_encoder_layer(lyr), tq)

    # permute(1,0,2).flatten(1) -> [B, L*D] (bf16), fused bottleneck + head
    flat = x_seq.reshape(B, L * D_MODEL)
    return bottleneck_head_call(flat, params)


def init_params(key, num_classes, L, C=3):
    keys = iter(jax.random.split(key, 64))

    def nrm(shape, s=0.02):
        return (s * jax.random.normal(next(keys), shape)).astype(jnp.float32)

    p = {
        "conv_w": nrm((D_MODEL, C, PATCH, PATCH), 0.1),
        "conv_b": nrm((D_MODEL,), 0.1),
        "bn_gamma": 1.0 + nrm((D_MODEL,), 0.1),
        "bn_beta": nrm((D_MODEL,), 0.1),
        "bn_mean": nrm((D_MODEL,), 0.1),
        "bn_var": 1.0 + jnp.abs(nrm((D_MODEL,), 0.1)),
    }
    layers = []
    for _ in range(2):
        layers.append({
            "in_proj_w": nrm((3 * D_MODEL, D_MODEL)),
            "in_proj_b": nrm((3 * D_MODEL,)),
            "out_proj_w": nrm((D_MODEL, D_MODEL)),
            "out_proj_b": nrm((D_MODEL,)),
            "ln1_g": 1.0 + nrm((D_MODEL,), 0.1), "ln1_b": nrm((D_MODEL,), 0.1),
            "w1": nrm((DFF, D_MODEL)), "b1": nrm((DFF,)),
            "w2": nrm((D_MODEL, DFF)), "b2": nrm((D_MODEL,)),
            "ln2_g": 1.0 + nrm((D_MODEL,), 0.1), "ln2_b": nrm((D_MODEL,), 0.1),
        })
    p["layers"] = layers
    # bottleneck sized to the (scaled-down) spatial grid: L tokens * 64 channels
    p["fc1_w"] = nrm((DFF, D_MODEL * L)); p["fc1_b"] = nrm((DFF,))
    p["fc2_w"] = nrm((128, DFF));         p["fc2_b"] = nrm((128,))
    p["head_w"] = nrm((num_classes, 128)); p["head_b"] = nrm((num_classes,))
    return p


if __name__ == "__main__":
    B, C, H, W = 2, 3, 16, 16          # small stand-in for [B, 3, 224, 224]
    num_classes = 10
    L = (H // PATCH) * (W // PATCH)    # 16 tokens (stand-in for 56*56)

    key = jax.random.PRNGKey(0)
    kx, kp = jax.random.split(key)
    x = jax.random.normal(kx, (B, C, H, W), dtype=jnp.float32)
    params = init_params(kp, num_classes, L, C)

    logits = forward(x, params)
    jax.block_until_ready(logits)
    assert logits.shape == (B, num_classes) and logits.dtype == jnp.float32
    print("KERNEL_OK")
</pallas_src>

<mosaic_0001>
module attributes {stable_mosaic.version = 11 : i64} {
  func.func @_patch_embed_kernel(%arg0: i32, %arg1: memref<32x48xbf16, #tpu.memory_space<vmem>>, %arg2: memref<48x64xbf16, #tpu.memory_space<vmem>>, %arg3: memref<1x64xf32, #tpu.memory_space<vmem>>, %arg4: memref<32x64xbf16, #tpu.memory_space<vmem>>) attributes {dimension_semantics = [#tpu.dimension_semantics<parallel>], iteration_bounds = array<i64: 1>, scalar_prefetch = 0 : i64, scratch_operands = 0 : i64, tpu.core_type = #tpu.core_type<tc>, window_params = [{transform_indices = @transform_0, window_bounds = array<i64: 32, 48>}, {pipeline_mode = #tpu.pipeline_mode<synchronous>, transform_indices = @transform_1, window_bounds = array<i64: 48, 64>}, {pipeline_mode = #tpu.pipeline_mode<synchronous>, transform_indices = @transform_2, window_bounds = array<i64: 1, 64>}, {transform_indices = @transform_3, window_bounds = array<i64: 32, 64>}]} {
    %c0 = arith.constant 0 : index
    %c0_0 = arith.constant 0 : index
    %0 = vector.load %arg1[%c0, %c0_0] : memref<32x48xbf16, #tpu.memory_space<vmem>>, vector<32x48xbf16>
    %c0_1 = arith.constant 0 : index
    %c0_2 = arith.constant 0 : index
    %1 = vector.load %arg2[%c0_1, %c0_2] : memref<48x64xbf16, #tpu.memory_space<vmem>>, vector<48x64xbf16>
    %cst = arith.constant dense<0.000000e+00> : vector<32x64xf32>
    %2 = tpu.matmul %0, %1, %cst {dimension_numbers = #tpu.dot_dimension_numbers<[1], [0], [0], [1], [0, 0, 1, 1], [], []>} : vector<32x48xbf16>, vector<48x64xbf16>, vector<32x64xf32> -> vector<32x64xf32>
    %c0_3 = arith.constant 0 : index
    %c0_4 = arith.constant 0 : index
    %3 = vector.load %arg3[%c0_3, %c0_4] : memref<1x64xf32, #tpu.memory_space<vmem>>, vector<1x64xf32>
    %4 = vector.broadcast %3 : vector<1x64xf32> to vector<32x64xf32>
    %5 = arith.addf %2, %4 : vector<32x64xf32>
    %cst_5 = arith.constant 0.000000e+00 : f32
    %6 = vector.broadcast %cst_5 : f32 to vector<32x64xf32>
    %7 = arith.maximumf %5, %6 : vector<32x64xf32>
    %8 = arith.truncf %7 : vector<32x64xf32> to vector<32x64xbf16>
    %c0_6 = arith.constant 0 : index
    %c0_7 = arith.constant 0 : index
    %9 = vector.load %arg4[%c0_6, %c0_7] : memref<32x64xbf16, #tpu.memory_space<vmem>>, vector<32x64xbf16>
    tpu.vector_store %arg4[%c0_6, %c0_7], %8 {strides = array<i32>} : memref<32x64xbf16, #tpu.memory_space<vmem>>, vector<32x64xbf16>,
    return
  }
  func.func @transform_0(%arg0: i32) -> (i32, i32) {
    %c0_i32 = arith.constant 0 : i32
    %c0_i32_0 = arith.constant 0 : i32
    return %arg0, %c0_i32 : i32, i32
  }
  func.func @transform_1(%arg0: i32) -> (i32, i32) {
    %c0_i32 = arith.constant 0 : i32
    %c0_i32_0 = arith.constant 0 : i32
    %c0_i32_1 = arith.constant 0 : i32
    return %c0_i32, %c0_i32_0 : i32, i32
  }
  func.func @transform_2(%arg0: i32) -> (i32, i32) {
    %c0_i32 = arith.constant 0 : i32
    %c0_i32_0 = arith.constant 0 : i32
    %c0_i32_1 = arith.constant 0 : i32
    return %c0_i32, %c0_i32_0 : i32, i32
  }
  func.func @transform_3(%arg0: i32) -> (i32, i32) {
    %c0_i32 = arith.constant 0 : i32
    %c0_i32_0 = arith.constant 0 : i32
    return %arg0, %c0_i32 : i32, i32
  }
}

</mosaic_0001>

<bundles_post_ra>
// kernel: tpu_custom_call.1
= control target key start
LH: loop header
LB: loop body
LE: loop exit
PB: predicated region body
PF: predicated region fallthrough
CT: control target
= control target key end

     0   :  { %8 = vsyncpa [#allocation3], 0  ;;  %s374_s0 = inlined_call_operand.hbm [shape: bf16[32,48], index: 0, kind: input, shape index: {}]   ;;  %s375_s1 = inlined_call_operand.hbm [shape: bf16[48,64], index: 1, kind: input, shape index: {}]   ;;  %s376_s2 = inlined_call_operand.vmem [shape: f32[1,64], index: 2, kind: input, shape index: {}]   ;;  %s377_s3 = inlined_call_operand.hbm [shape: bf16[32,64], index: 3, kind: output, shape index: {}]  }
   0x1   :  { %9 = vsyncpa [#allocation6], 0 }
   0x2   :  { %10 = vsyncpa [#allocation4], 0  ;;  %s301_s12 = smov [#allocation2]   ;;  %s229_s16 = scalar_lea.hbm %s374_s0, 256 }
   0x3   :  { %s16_s13 = sshll.u32 %s301_s12, 4  ;;  %p230_p0 = scmp.ne.s32.totalorder %s374_s0, %s229_s16  ;;  %s17_s13 = int_to_ptr.vmem [resolvable:$true] %s16_s13 }
   0x4   :  { %p233_p1 = scmp.lt.u32.totalorder %s229_s16, %s374_s0 }
   0x6   :  { %p235_p2 = pnand %p233_p1, %p230_p0 }
   0x8   :  { %238 = shalt.err (!%p235_p2)
}
   0x9   :  { %s239_s21 = scalar_lea.vmem %s17_s13, 256  ;;  %p244_p4 = scmp.lt.s32.totalorder %s17_s13, %s17_s13 }
   0xa   :  { %p240_p3 = scmp.ne.s32.totalorder %s17_s13, %s239_s21  ;;  %p245_p5 = scmp.lt.s32.totalorder %s239_s21, %s239_s21 }
   0xc   :  { %p246_p6 = por %p245_p5, %p244_p4 }
   0xe   :  { %p247_p7 = pnand %p246_p6, %p240_p3 }
  0x10   :  { %250 = shalt.err (!%p247_p7)
}
  0x11   :  { %s302_s22 = smov 64   ;;  %s303_s23 = smov 4  }
  0x12   :  { %22 = dma.hbm_to_vmem [thread:$0]  %s374_s0, 256, %s17_s13, [#allocation3], %s302_s22, %s302_s22, %s303_s23  }
  0x13   :  { %s304_s26 = smov [#allocation5]   ;;  %s251_s30 = scalar_lea.hbm %s375_s1, 384 }
  0x14   :  { %s28_s27 = sshll.u32 %s304_s26, 4  ;;  %p252_p8 = scmp.ne.s32.totalorder %s375_s1, %s251_s30  ;;  %s29_s27 = int_to_ptr.vmem [resolvable:$true] %s28_s27 }
  0x15   :  { %p255_p9 = scmp.lt.u32.totalorder %s251_s30, %s375_s1 }
  0x17   :  { %p257_p10 = pnand %p255_p9, %p252_p8 }
  0x19   :  { %260 = shalt.err (!%p257_p10)
}
  0x1a   :  { %s261_s8 = scalar_lea.vmem %s29_s27, 384  ;;  %p266_p12 = scmp.lt.s32.totalorder %s29_s27, %s29_s27 }
  0x1b   :  { %p262_p11 = scmp.ne.s32.totalorder %s29_s27, %s261_s8  ;;  %p267_p13 = scmp.lt.s32.totalorder %s261_s8, %s261_s8 }
  0x1d   :  { %p268_p0 = por %p267_p13, %p266_p12 }
  0x1f   :  { %p269_p1 = pnand %p268_p0, %p262_p11 }
  0x21   :  { %272 = shalt.err (!%p269_p1)
}
  0x22   :  { %34 = dma.hbm_to_vmem [thread:$0]  %s375_s1, 384, %s29_s27, [#allocation6], %s302_s22, %s302_s22, %s303_s23  }
  0x23   :  { %295 = dma.done.wait [#allocation3], 256  }
  0x24   :  { %296 = vsyncadd [#allocation3], 4294967040 }
  0x25   :  { %297 = dma.done.wait [#allocation6], 384  }
  0x26   :  { %298 = vsyncadd [#allocation6], 4294966912  ;;  %v224_v0 = vld [vmem:[#allocation5] sm:$0xff]   ;;  %v225_v1 = vld [vmem:[#allocation5 + $0x8] sm:$0xff]   ;;  %vm89_vm0 = vcmask 392192   ;;  %vm165_vm1 = vcmask 519168  }
  0x27   :  { %209 = vmatprep.subr.bf16.mxu0 %v224_v0  ;;  %v227_v2 = vld [vmem:[#allocation2] sm:$0xff]   ;;  %v228_v4 = vld [vmem:[#allocation2 + $0x8] sm:$0xff]   ;;  %s305_s11 = smov [#allocation7]  }
  0x28   :  { %210 = vmatpush3.bf16.msra.mxu0 %v224_v0  ;;  %v226_v3 = vld [vmem:[#allocation5 + $0x10] sm:$0xff]   ;;  %215 = vmatprep.mubr.msk.bf16.mxu0 %vm89_vm0, %v227_v2  ;;  %s175_s12 = sshll.u32 %s305_s11, 4  ;;  %s176_s12 = int_to_ptr.vmem [resolvable:$true] %s175_s12 }
  0x29   :  { %211 = vmatprep.subr.bf16.mxu0 %v225_v1  ;;  %v188_v5 = vld [vmem:[%s376_s2] ss:$0 sm:$0xff]  ;;  %s273_s2 = scalar_lea.vmem %s176_s12, 256  ;;  %p278_p3 = scmp.lt.s32.totalorder %s176_s12, %s176_s12 }
  0x2a   :  { %p274_p2 = scmp.ne.s32.totalorder %s176_s12, %s273_s2  ;;  %p279_p4 = scmp.lt.s32.totalorder %s273_s2, %s273_s2 }
  0x2c   :  { %212 = vmatpush3.bf16.msra.mxu0 %v225_v1  ;;  %p280_p5 = por %p279_p4, %p278_p3 }
  0x2d   :  { %213 = vmatprep.subr.bf16.mxu0 %v226_v3 }
  0x2e   :  { %p281_p6 = pnand %p280_p5, %p274_p2 }
  0x30   :  { %214 = vmatpush3.bf16.msra.mxu0 %v226_v3 }
  0x33   :  { %216 = vmatmul.mubr.msk.bf16.vlgmr.msra.gmra.mrb[0].mxu0 %vm89_vm0, %v228_v4 }
 0x106   :  { %v217_v6 = vpop.f32.mrb[0].mxu0 }
 0x107   :  { %v139_v7 = vadd.f32 %v217_v6, %v188_v5  ;;  %v130_v8 = vpop.f32.mrb[1].mxu0 }
 0x108   :  { %v131_v9 = vadd.f32 %v188_v5, %v130_v8  ;;  %v218_v10 = vpop.f32.mrb[2].mxu0 }
 0x109   :  { %v147_v11 = vmax.f32 %v139_v7, 0.0  ;;  %v142_v12 = vadd.f32 %v218_v10, %v188_v5  ;;  %v133_v13 = vpop.f32.mrb[3].mxu0 }
 0x10a   :  { %v145_v14 = vmax.f32 %v131_v9, 0.0  ;;  %v134_v15 = vadd.f32 %v188_v5, %v133_v13 }
 0x10b   :  { %v202_v16 = vpack.c.bf16 %v147_v11, %v147_v11  ;;  %v148_v17 = vmax.f32 %v142_v12, 0.0 }
 0x10c   :  { %v200_v18 = vpack.c.bf16 %v145_v14, %v145_v14  ;;  %v146_v19 = vmax.f32 %v134_v15, 0.0 }
 0x10d   :  { %168 = vst.msk [vmem:[#allocation7 + $0x8] sm:$0xf] %vm165_vm1, %v202_v16  ;;  %v203_v20 = vpack.c.bf16 %v148_v17, %v148_v17 }
 0x10e   :  { %166 = vst.msk [vmem:[#allocation7] sm:$0xf] %vm165_vm1, %v200_v18  ;;  %v201_v21 = vpack.c.bf16 %v146_v19, %v146_v19 }
 0x10f   :  { %169 = vst.msk [vmem:[#allocation7 + $0xc] sm:$0xf] %vm165_vm1, %v203_v20 }
 0x110   :  { %167 = vst.msk [vmem:[#allocation7 + $0x4] sm:$0xf] %vm165_vm1, %v201_v21 }
 0x111   :  { %284 = shalt.err (!%p281_p6)
}
 0x112   :  { %s285_s15 = scalar_lea.hbm %s377_s3, 256 }
 0x113   :  { %p286_p7 = scmp.ne.s32.totalorder %s377_s3, %s285_s15  ;;  %p289_p8 = scmp.lt.u32.totalorder %s285_s15, %s377_s3 }
 0x115   :  { %p291_p9 = pnand %p289_p8, %p286_p7 }
 0x117   :  { %294 = shalt.err (!%p291_p9)
}
 0x118   :  { %181 = dma.vmem_to_hbm [thread:$0]  %s176_s12, 256, %s377_s3, [#allocation4], %s302_s22, %s302_s22, %s303_s23  }
 0x119   :  { %299 = dma.done.wait [#allocation4], 256  }
 0x11a   :  { %300 = vsyncadd [#allocation4], 4294967040 }
 0x11b   :  { %185 = vsyncpa [#allocation3], 1 }
 0x11c   :  { %186 = vsyncpa [#allocation6], 1 }
 0x11d   :  { %187 = vsyncpa [#allocation4], 1 }

</bundles_post_ra>
